<compile_context>
chip_gen: v7x
topology: tpu7x:2x2x1
jax: 0.10.0
libtpu: 0.0.40
codegen_flags: <defaults>
</compile_context>

<pallas_src>
import functools

import jax
import jax.numpy as jnp
from jax import lax
from jax.experimental import pallas as pl
from jax.experimental.pallas import tpu as pltpu


def _tap_meta(stride):
    """For each 3x3 tap: (parity-grid id, row offset, col offset) in output coords."""
    metas = []
    for kh in range(3):
        for kw in range(3):
            dh, dw = kh - 1, kw - 1
            a, ry = dh % stride, dh // stride
            b, cx = dw % stride, dw // stride
            metas.append((a * stride + b, ry, cx))
    return metas


def _pick_nb(N, HW, lane_target=512, lane_cap=2048):
    """How many images to pack into the lane dimension per grid step."""
    best = 1
    for nb in range(2, N + 1):
        if N % nb:
            continue
        if nb * HW > lane_cap:
            break
        lanes_now = best * HW
        if lanes_now >= lane_target:
            break
        # once lanes are dense enough, keep >=2 grid steps (v7x's two TensorCores)
        if N // nb < 2 and lanes_now >= 128:
            break
        best = nb
    return best


def _fold_bn(bn, eps=1e-5):
    gamma, beta, mean, var = bn
    scale = gamma / jnp.sqrt(var + eps)
    bias = beta - mean * scale
    return (scale.reshape(-1, 1).astype(jnp.float32),
            bias.reshape(-1, 1).astype(jnp.float32))


def _make_block_kernel(Wo, Cin, Cout, G, stride, has_proj, m1_off, m2_off,
                       compute_dtype):
    conv1_meta = _tap_meta(stride)
    conv2_meta = _tap_meta(1)

    def fill_slab(slab_ref, grids, metas, C, mask_ref, m_off):
        L = slab_ref.shape[-1]
        for t, (g, ry, cx) in enumerate(metas):
            src = grids[g]                                # (C, L) compute dtype
            if ry == 0 and cx == 0:
                # unshifted taps: validity mask is identically 1 -> plain store
                slab_ref[t * C:(t + 1) * C, :] = src
                continue
            off = ry * Wo + cx
            # lane rotation on the XLU; wrapped / cross-image lanes are zeroed
            # by the destination-coordinate validity mask below
            shifted = pltpu.roll(src, shift=(-off) % L, axis=1)
            mask = mask_ref[m_off + t:m_off + t + 1, :]    # (1, L) of 0/1
            slab_ref[t * C:(t + 1) * C, :] = shifted * mask

    def kernel(xg_ref, mask_ref, w1_ref, b1_ref, w2_ref, b2_ref, out_ref,
               slab1_ref, slab2_ref):
        # ---- conv1 (3x3, stride folded into parity grids, bn1 scale folded
        #      into w1) + bias + relu ----
        grids1 = [xg_ref[0, g] for g in range(G)]
        fill_slab(slab1_ref, grids1, conv1_meta, Cin, mask_ref, m1_off)
        acc1 = jnp.dot(w1_ref[...], slab1_ref[...],
                       preferred_element_type=jnp.float32)        # (Cout, L)
        out1 = jnp.maximum(acc1 + b1_ref[...], 0.0).astype(compute_dtype)

        # ---- conv2 (3x3, stride 1, bn2 scale folded) [+ fused 1x1 shortcut] ----
        fill_slab(slab2_ref, [out1], conv2_meta, Cout, mask_ref, m2_off)
        if has_proj:
            # shortcut operand: parity grid (0,0) == x[:, ::stride, ::stride]
            slab2_ref[9 * Cout:9 * Cout + Cin, :] = xg_ref[0, 0]
        acc2 = jnp.dot(w2_ref[...], slab2_ref[...],
                       preferred_element_type=jnp.float32)        # (Cout, L)
        out2 = acc2 + b2_ref[...]
        if not has_proj:
            out2 = out2 + xg_ref[0, 0].astype(jnp.float32)        # identity shortcut
        out_ref[0] = jnp.maximum(out2, 0.0).astype(out_ref.dtype)

    return kernel


@functools.partial(jax.jit, static_argnames=("stride", "compute_dtype"))
def _forward_impl(x_nchw, params, *, stride, compute_dtype):
    N, Cin, H, W = x_nchw.shape
    Cout = params["w1"].shape[0]
    assert stride == 1 or (H % stride == 0 and W % stride == 0)
    Ho, Wo = H // stride, W // stride          # 3x3 conv, pad=1  =>  Ho = H // stride
    HW = Ho * Wo
    G = stride * stride
    has_proj = (stride != 1) or (Cin != Cout)

    nb = _pick_nb(N, HW)
    L = nb * HW
    n_steps = N // nb

    # ---- activations: space-to-depth parity grids, nb images packed on lanes ----
    x = x_nchw.astype(compute_dtype)
    if stride == 1:
        xg = x.reshape(N, 1, Cin, HW)
    else:
        xg = jnp.stack([x[:, :, a::stride, b::stride]
                        for a in range(stride) for b in range(stride)], axis=1)
        xg = xg.reshape(N, G, Cin, HW)
    xg = (xg.reshape(n_steps, nb, G, Cin, HW)
            .transpose(0, 2, 3, 1, 4)
            .reshape(n_steps, G, Cin, L))

    # ---- 0/1 validity masks per tap (destination coordinates), tiled over nb ----
    conv1_meta = _tap_meta(stride)
    if stride == 1:
        mask_meta, m1_off, m2_off = conv1_meta, 0, 0          # shared by both convs
    else:
        mask_meta, m1_off, m2_off = conv1_meta + _tap_meta(1), 0, 9
    yy = jnp.arange(Ho, dtype=jnp.int32).reshape(Ho, 1)
    xx = jnp.arange(Wo, dtype=jnp.int32).reshape(1, Wo)
    rows = [(((yy + ry) >= 0) & ((yy + ry) < Ho) &
             ((xx + cx) >= 0) & ((xx + cx) < Wo)).reshape(HW)
            for (_, ry, cx) in mask_meta]
    masks = jnp.tile(jnp.stack(rows).astype(compute_dtype), (1, nb))   # (n_masks, L)
    n_masks = masks.shape[0]

    # ---- weights: BN scales folded in f32, one cast; shortcut merged into conv2 ----
    s1, b1 = _fold_bn(params["bn1"])
    s2, b2 = _fold_bn(params["bn2"])
    w1k = jnp.transpose(params["w1"], (0, 2, 3, 1)).reshape(Cout, 9 * Cin)
    w1k = (w1k * s1).astype(compute_dtype)
    w2k = jnp.transpose(params["w2"], (0, 2, 3, 1)).reshape(Cout, 9 * Cout) * s2
    if has_proj:
        ss, bs = _fold_bn(params["bns"])
        wsk = params["ws"].reshape(Cout, Cin) * ss
        wcat = jnp.concatenate([w2k, wsk], axis=1).astype(compute_dtype)
        bcat = b2 + bs
        K2 = 9 * Cout + Cin
    else:
        wcat = w2k.astype(compute_dtype)
        bcat = b2
        K2 = 9 * Cout

    inputs = [xg, masks, w1k, b1, wcat, bcat]
    in_specs = [
        pl.BlockSpec((1, G, Cin, L), lambda n: (n, 0, 0, 0)),
        pl.BlockSpec((n_masks, L), lambda n: (0, 0)),
        pl.BlockSpec((Cout, 9 * Cin), lambda n: (0, 0)),
        pl.BlockSpec((Cout, 1), lambda n: (0, 0)),
        pl.BlockSpec((Cout, K2), lambda n: (0, 0)),
        pl.BlockSpec((Cout, 1), lambda n: (0, 0)),
    ]

    flops = 2 * N * HW * Cout * (9 * Cin + K2)
    out_itemsize = jnp.dtype(compute_dtype).itemsize
    bytes_accessed = int(sum(a.size * a.dtype.itemsize for a in inputs)
                         + N * Cout * HW * out_itemsize)

    kernel = _make_block_kernel(Wo, Cin, Cout, G, stride, has_proj,
                                m1_off, m2_off, compute_dtype)
    out = pl.pallas_call(
        kernel,
        out_shape=jax.ShapeDtypeStruct((n_steps, Cout, L), compute_dtype),
        grid=(n_steps,),
        in_specs=in_specs,
        out_specs=pl.BlockSpec((1, Cout, L), lambda n: (n, 0, 0)),
        scratch_shapes=[pltpu.VMEM((9 * Cin, L), compute_dtype),
                        pltpu.VMEM((K2, L), compute_dtype)],
        compiler_params=pltpu.CompilerParams(dimension_semantics=("parallel",)),
        cost_estimate=pl.CostEstimate(flops=flops, transcendentals=0,
                                      bytes_accessed=bytes_accessed),
    )(*inputs)

    # unpack the lane-packed batch back to NCHW (wrapper-side transpose)
    out = (out.reshape(n_steps, Cout, nb, Ho, Wo)
              .transpose(0, 2, 1, 3, 4)
              .reshape(N, Cout, Ho, Wo))
    return out


def basic_block_forward(x_nchw, params, stride, compute_dtype=jnp.bfloat16):
    """Pallas BasicBlock.forward. x_nchw: (N, Cin, H, W) f32; output in compute_dtype."""
    return _forward_impl(x_nchw, params, stride=stride, compute_dtype=compute_dtype)


# ---------------- pure-JAX reference (mirrors the PyTorch forward) ----------------
def reference_forward(x, params, stride, cast_dtype=None):
    def cast(a):
        return a.astype(cast_dtype).astype(jnp.float32) if cast_dtype is not None else a

    def conv(x, w, s, pad):
        return lax.conv_general_dilated(x, w, (s, s), pad,
                                        dimension_numbers=("NCHW", "OIHW", "NCHW"))

    def bn(x, p, eps=1e-5):
        gamma, beta, mean, var = p
        scale = gamma / jnp.sqrt(var + eps)
        return x * scale[None, :, None, None] + (beta - mean * scale)[None, :, None, None]

    xc = cast(x)
    out = jax.nn.relu(bn(conv(xc, cast(params["w1"]), stride, [(1, 1), (1, 1)]), params["bn1"]))
    out = bn(conv(out, cast(params["w2"]), 1, [(1, 1), (1, 1)]), params["bn2"])
    Cin, Cout = x.shape[1], params["w1"].shape[0]
    if stride != 1 or Cin != Cout:
        sc = bn(conv(xc, cast(params["ws"]), stride, [(0, 0), (0, 0)]), params["bns"])
    else:
        sc = xc
    return jax.nn.relu(out + sc)


def init_params(key, Cin, Cout, stride):
    ks = jax.random.split(key, 6)

    def conv_init(k, cout, cin, kh, kw):
        fan_in = cin * kh * kw
        return jax.random.normal(k, (cout, cin, kh, kw), jnp.float32) * (2.0 / fan_in) ** 0.5

    def bn_params(k):
        k1, k2, k3, k4 = jax.random.split(k, 4)
        return (1.0 + 0.1 * jax.random.normal(k1, (Cout,), jnp.float32),
                0.1 * jax.random.normal(k2, (Cout,), jnp.float32),
                0.05 * jax.random.normal(k3, (Cout,), jnp.float32),
                0.5 + jax.random.uniform(k4, (Cout,), jnp.float32))

    params = {
        "w1": conv_init(ks[0], Cout, Cin, 3, 3),
        "bn1": bn_params(ks[1]),
        "w2": conv_init(ks[2], Cout, Cout, 3, 3),
        "bn2": bn_params(ks[3]),
    }
    if stride != 1 or Cin != Cout:
        params["ws"] = conv_init(ks[4], Cout, Cin, 1, 1)
        params["bns"] = bn_params(ks[5])
    return params


if __name__ == "__main__":
    key = jax.random.PRNGKey(0)
    kx, kp1, kp2 = jax.random.split(key, 3)
    # CIFAR-ResNet-like small shapes: N=2, Cin=16, 16x16 spatial
    x = jax.random.normal(kx, (2, 16, 16, 16), jnp.float32)

    cases = [
        # (name, params, stride, expected output shape)
        ("proj",     init_params(kp1, 16, 32, stride=2), 2, (2, 32, 8, 8)),     # downsample block
        ("identity", init_params(kp2, 16, 16, stride=1), 1, (2, 16, 16, 16)),   # same-shape block
    ]
    for name, p, stride, shape in cases:
        # structural / exact-math check: same kernel path, f32 end to end
        out = jax.block_until_ready(
            basic_block_forward(x, p, stride, compute_dtype=jnp.float32))
        ref = reference_forward(x, p, stride)
        assert out.shape == shape, (name, out.shape)
        assert jnp.allclose(out, ref, atol=1e-3, rtol=1e-3), f"{name}: f32 mismatch"

        # default perf path: bf16 activations/weights/slabs/output, f32 accumulation
        out_bf = jax.block_until_ready(basic_block_forward(x, p, stride))
        ref_bf = reference_forward(x, p, stride, cast_dtype=jnp.bfloat16)
        assert out_bf.shape == shape, (name, out_bf.shape)
        assert jnp.allclose(out_bf.astype(jnp.float32), ref_bf,
                            atol=1e-1, rtol=1e-1), f"{name}: bf16 mismatch"

    print("KERNEL_OK")
</pallas_src>

<mosaic_0001>
module attributes {stable_mosaic.version = 11 : i64} {
  func.func @kernel(%arg0: i32, %arg1: memref<1x4x16x128xf32, #tpu.memory_space<vmem>>, %arg2: memref<18x128xf32, #tpu.memory_space<vmem>>, %arg3: memref<32x144xf32, #tpu.memory_space<vmem>>, %arg4: memref<32x1xf32, #tpu.memory_space<vmem>>, %arg5: memref<32x304xf32, #tpu.memory_space<vmem>>, %arg6: memref<32x1xf32, #tpu.memory_space<vmem>>, %arg7: memref<1x32x128xf32, #tpu.memory_space<vmem>>, %arg8: memref<144x128xf32, #tpu.memory_space<vmem>>, %arg9: memref<304x128xf32, #tpu.memory_space<vmem>>) attributes {dimension_semantics = [#tpu.dimension_semantics<parallel>], iteration_bounds = array<i64: 1>, scalar_prefetch = 0 : i64, scratch_operands = 2 : i64, tpu.core_type = #tpu.core_type<tc>, window_params = [{transform_indices = @transform_0, window_bounds = array<i64: 1, 4, 16, 128>}, {pipeline_mode = #tpu.pipeline_mode<synchronous>, transform_indices = @transform_1, window_bounds = array<i64: 18, 128>}, {pipeline_mode = #tpu.pipeline_mode<synchronous>, transform_indices = @transform_2, window_bounds = array<i64: 32, 144>}, {pipeline_mode = #tpu.pipeline_mode<synchronous>, transform_indices = @transform_3, window_bounds = array<i64: 32, 1>}, {pipeline_mode = #tpu.pipeline_mode<synchronous>, transform_indices = @transform_4, window_bounds = array<i64: 32, 304>}, {pipeline_mode = #tpu.pipeline_mode<synchronous>, transform_indices = @transform_5, window_bounds = array<i64: 32, 1>}, {transform_indices = @transform_6, window_bounds = array<i64: 1, 32, 128>}]} {
    %c0 = arith.constant 0 : index
    %c0_0 = arith.constant 0 : index
    %c0_1 = arith.constant 0 : index
    %c0_2 = arith.constant 0 : index
    %0 = vector.load %arg1[%c0, %c0_0, %c0_1, %c0_2] : memref<1x4x16x128xf32, #tpu.memory_space<vmem>>, vector<1x1x16x128xf32>
    %1 = vector.shape_cast %0 : vector<1x1x16x128xf32> to vector<16x128xf32>
    %c0_3 = arith.constant 0 : index
    %c1 = arith.constant 1 : index
    %c0_4 = arith.constant 0 : index
    %c0_5 = arith.constant 0 : index
    %2 = vector.load %arg1[%c0_3, %c1, %c0_4, %c0_5] : memref<1x4x16x128xf32, #tpu.memory_space<vmem>>, vector<1x1x16x128xf32>
    %3 = vector.shape_cast %2 : vector<1x1x16x128xf32> to vector<16x128xf32>
    %c0_6 = arith.constant 0 : index
    %c2 = arith.constant 2 : index
    %c0_7 = arith.constant 0 : index
    %c0_8 = arith.constant 0 : index
    %4 = vector.load %arg1[%c0_6, %c2, %c0_7, %c0_8] : memref<1x4x16x128xf32, #tpu.memory_space<vmem>>, vector<1x1x16x128xf32>
    %5 = vector.shape_cast %4 : vector<1x1x16x128xf32> to vector<16x128xf32>
    %c0_9 = arith.constant 0 : index
    %c3 = arith.constant 3 : index
    %c0_10 = arith.constant 0 : index
    %c0_11 = arith.constant 0 : index
    %6 = vector.load %arg1[%c0_9, %c3, %c0_10, %c0_11] : memref<1x4x16x128xf32, #tpu.memory_space<vmem>>, vector<1x1x16x128xf32>
    %7 = vector.shape_cast %6 : vector<1x1x16x128xf32> to vector<16x128xf32>
    %c9_i32 = arith.constant 9 : i32
    %8 = tpu.dynamic_rotate %7 by %c9_i32 dim 1 : vector<16x128xf32>, i32 -> vector<16x128xf32>
    %c0_12 = arith.constant 0 : index
    %c0_13 = arith.constant 0 : index
    %9 = vector.load %arg2[%c0_12, %c0_13] : memref<18x128xf32, #tpu.memory_space<vmem>>, vector<1x128xf32>
    %10 = vector.broadcast %9 : vector<1x128xf32> to vector<16x128xf32>
    %11 = arith.mulf %8, %10 : vector<16x128xf32>
    %c0_14 = arith.constant 0 : index
    %c0_15 = arith.constant 0 : index
    %12 = vector.load %arg8[%c0_14, %c0_15] : memref<144x128xf32, #tpu.memory_space<vmem>>, vector<16x128xf32>
    tpu.vector_store %arg8[%c0_14, %c0_15], %11 {strides = array<i32>} : memref<144x128xf32, #tpu.memory_space<vmem>>, vector<16x128xf32>,
    %c8_i32 = arith.constant 8 : i32
    %13 = tpu.dynamic_rotate %5 by %c8_i32 dim 1 : vector<16x128xf32>, i32 -> vector<16x128xf32>
    %c1_16 = arith.constant 1 : index
    %c0_17 = arith.constant 0 : index
    %14 = vector.load %arg2[%c1_16, %c0_17] : memref<18x128xf32, #tpu.memory_space<vmem>>, vector<1x128xf32>
    %15 = vector.broadcast %14 : vector<1x128xf32> to vector<16x128xf32>
    %16 = arith.mulf %13, %15 : vector<16x128xf32>
    %c16 = arith.constant 16 : index
    %c0_18 = arith.constant 0 : index
    %17 = vector.load %arg8[%c16, %c0_18] : memref<144x128xf32, #tpu.memory_space<vmem>>, vector<16x128xf32>
    tpu.vector_store %arg8[%c16, %c0_18], %16 {strides = array<i32>} : memref<144x128xf32, #tpu.memory_space<vmem>>, vector<16x128xf32>,
    %c8_i32_19 = arith.constant 8 : i32
    %18 = tpu.dynamic_rotate %7 by %c8_i32_19 dim 1 : vector<16x128xf32>, i32 -> vector<16x128xf32>
    %c2_20 = arith.constant 2 : index
    %c0_21 = arith.constant 0 : index
    %19 = vector.load %arg2[%c2_20, %c0_21] : memref<18x128xf32, #tpu.memory_space<vmem>>, vector<1x128xf32>
    %20 = vector.broadcast %19 : vector<1x128xf32> to vector<16x128xf32>
    %21 = arith.mulf %18, %20 : vector<16x128xf32>
    %c32 = arith.constant 32 : index
    %c0_22 = arith.constant 0 : index
    %22 = vector.load %arg8[%c32, %c0_22] : memref<144x128xf32, #tpu.memory_space<vmem>>, vector<16x128xf32>
    tpu.vector_store %arg8[%c32, %c0_22], %21 {strides = array<i32>} : memref<144x128xf32, #tpu.memory_space<vmem>>, vector<16x128xf32>,
    %c1_i32 = arith.constant 1 : i32
    %23 = tpu.dynamic_rotate %3 by %c1_i32 dim 1 : vector<16x128xf32>, i32 -> vector<16x128xf32>
    %c3_23 = arith.constant 3 : index
    %c0_24 = arith.constant 0 : index
    %24 = vector.load %arg2[%c3_23, %c0_24] : memref<18x128xf32, #tpu.memory_space<vmem>>, vector<1x128xf32>
    %25 = vector.broadcast %24 : vector<1x128xf32> to vector<16x128xf32>
    %26 = arith.mulf %23, %25 : vector<16x128xf32>
    %c48 = arith.constant 48 : index
    %c0_25 = arith.constant 0 : index
    %27 = vector.load %arg8[%c48, %c0_25] : memref<144x128xf32, #tpu.memory_space<vmem>>, vector<16x128xf32>
    tpu.vector_store %arg8[%c48, %c0_25], %26 {strides = array<i32>} : memref<144x128xf32, #tpu.memory_space<vmem>>, vector<16x128xf32>,
    %c64 = arith.constant 64 : index
    %c0_26 = arith.constant 0 : index
    %28 = vector.load %arg8[%c64, %c0_26] : memref<144x128xf32, #tpu.memory_space<vmem>>, vector<16x128xf32>
    tpu.vector_store %arg8[%c64, %c0_26], %1 {strides = array<i32>} : memref<144x128xf32, #tpu.memory_space<vmem>>, vector<16x128xf32>,
    %c80 = arith.constant 80 : index
    %c0_27 = arith.constant 0 : index
    %29 = vector.load %arg8[%c80, %c0_27] : memref<144x128xf32, #tpu.memory_space<vmem>>, vector<16x128xf32>
    tpu.vector_store %arg8[%c80, %c0_27], %3 {strides = array<i32>} : memref<144x128xf32, #tpu.memory_space<vmem>>, vector<16x128xf32>,
    %c1_i32_28 = arith.constant 1 : i32
    %30 = tpu.dynamic_rotate %7 by %c1_i32_28 dim 1 : vector<16x128xf32>, i32 -> vector<16x128xf32>
    %c6 = arith.constant 6 : index
    %c0_29 = arith.constant 0 : index
    %31 = vector.load %arg2[%c6, %c0_29] : memref<18x128xf32, #tpu.memory_space<vmem>>, vector<1x128xf32>
    %32 = vector.broadcast %31 : vector<1x128xf32> to vector<16x128xf32>
    %33 = arith.mulf %30, %32 : vector<16x128xf32>
    %c96 = arith.constant 96 : index
    %c0_30 = arith.constant 0 : index
    %34 = vector.load %arg8[%c96, %c0_30] : memref<144x128xf32, #tpu.memory_space<vmem>>, vector<16x128xf32>
    tpu.vector_store %arg8[%c96, %c0_30], %33 {strides = array<i32>} : memref<144x128xf32, #tpu.memory_space<vmem>>, vector<16x128xf32>,
    %c112 = arith.constant 112 : index
    %c0_31 = arith.constant 0 : index
    %35 = vector.load %arg8[%c112, %c0_31] : memref<144x128xf32, #tpu.memory_space<vmem>>, vector<16x128xf32>
    tpu.vector_store %arg8[%c112, %c0_31], %5 {strides = array<i32>} : memref<144x128xf32, #tpu.memory_space<vmem>>, vector<16x128xf32>,
    %c128 = arith.constant 128 : index
    %c0_32 = arith.constant 0 : index
    %36 = vector.load %arg8[%c128, %c0_32] : memref<144x128xf32, #tpu.memory_space<vmem>>, vector<16x128xf32>
    tpu.vector_store %arg8[%c128, %c0_32], %7 {strides = array<i32>} : memref<144x128xf32, #tpu.memory_space<vmem>>, vector<16x128xf32>,
    %c0_33 = arith.constant 0 : index
    %c0_34 = arith.constant 0 : index
    %37 = vector.load %arg3[%c0_33, %c0_34] : memref<32x144xf32, #tpu.memory_space<vmem>>, vector<32x144xf32>
    %c0_35 = arith.constant 0 : index
    %c0_36 = arith.constant 0 : index
    %38 = vector.load %arg8[%c0_35, %c0_36] : memref<144x128xf32, #tpu.memory_space<vmem>>, vector<144x128xf32>
    %cst = arith.constant dense<0.000000e+00> : vector<32x128xf32>
    %39 = tpu.matmul %37, %38, %cst {dimension_numbers = #tpu.dot_dimension_numbers<[1], [0], [0], [1], [0, 0, 1, 1], [], []>} : vector<32x144xf32>, vector<144x128xf32>, vector<32x128xf32> -> vector<32x128xf32>
    %c0_37 = arith.constant 0 : index
    %c0_38 = arith.constant 0 : index
    %40 = vector.load %arg4[%c0_37, %c0_38] : memref<32x1xf32, #tpu.memory_space<vmem>>, vector<32x1xf32>
    %41 = vector.broadcast %40 : vector<32x1xf32> to vector<32x128xf32>
    %42 = arith.addf %39, %41 : vector<32x128xf32>
    %cst_39 = arith.constant 0.000000e+00 : f32
    %43 = vector.broadcast %cst_39 : f32 to vector<32x128xf32>
    %44 = arith.maximumf %42, %43 : vector<32x128xf32>
    %c9_i32_40 = arith.constant 9 : i32
    %45 = tpu.dynamic_rotate %44 by %c9_i32_40 dim 1 : vector<32x128xf32>, i32 -> vector<32x128xf32>
    %c9 = arith.constant 9 : index
    %c0_41 = arith.constant 0 : index
    %46 = vector.load %arg2[%c9, %c0_41] : memref<18x128xf32, #tpu.memory_space<vmem>>, vector<1x128xf32>
    %47 = vector.broadcast %46 : vector<1x128xf32> to vector<32x128xf32>
    %48 = arith.mulf %45, %47 : vector<32x128xf32>
    %c0_42 = arith.constant 0 : index
    %c0_43 = arith.constant 0 : index
    %49 = vector.load %arg9[%c0_42, %c0_43] : memref<304x128xf32, #tpu.memory_space<vmem>>, vector<32x128xf32>
    tpu.vector_store %arg9[%c0_42, %c0_43], %48 {strides = array<i32>} : memref<304x128xf32, #tpu.memory_space<vmem>>, vector<32x128xf32>,
    %c8_i32_44 = arith.constant 8 : i32
    %50 = tpu.dynamic_rotate %44 by %c8_i32_44 dim 1 : vector<32x128xf32>, i32 -> vector<32x128xf32>
    %c10 = arith.constant 10 : index
    %c0_45 = arith.constant 0 : index
    %51 = vector.load %arg2[%c10, %c0_45] : memref<18x128xf32, #tpu.memory_space<vmem>>, vector<1x128xf32>
    %52 = vector.broadcast %51 : vector<1x128xf32> to vector<32x128xf32>
    %53 = arith.mulf %50, %52 : vector<32x128xf32>
    %c32_46 = arith.constant 32 : index
    %c0_47 = arith.constant 0 : index
    %54 = vector.load %arg9[%c32_46, %c0_47] : memref<304x128xf32, #tpu.memory_space<vmem>>, vector<32x128xf32>
    tpu.vector_store %arg9[%c32_46, %c0_47], %53 {strides = array<i32>} : memref<304x128xf32, #tpu.memory_space<vmem>>, vector<32x128xf32>,
    %c7_i32 = arith.constant 7 : i32
    %55 = tpu.dynamic_rotate %44 by %c7_i32 dim 1 : vector<32x128xf32>, i32 -> vector<32x128xf32>
    %c11 = arith.constant 11 : index
    %c0_48 = arith.constant 0 : index
    %56 = vector.load %arg2[%c11, %c0_48] : memref<18x128xf32, #tpu.memory_space<vmem>>, vector<1x128xf32>
    %57 = vector.broadcast %56 : vector<1x128xf32> to vector<32x128xf32>
    %58 = arith.mulf %55, %57 : vector<32x128xf32>
    %c64_49 = arith.constant 64 : index
    %c0_50 = arith.constant 0 : index
    %59 = vector.load %arg9[%c64_49, %c0_50] : memref<304x128xf32, #tpu.memory_space<vmem>>, vector<32x128xf32>
    tpu.vector_store %arg9[%c64_49, %c0_50], %58 {strides = array<i32>} : memref<304x128xf32, #tpu.memory_space<vmem>>, vector<32x128xf32>,
    %c1_i32_51 = arith.constant 1 : i32
    %60 = tpu.dynamic_rotate %44 by %c1_i32_51 dim 1 : vector<32x128xf32>, i32 -> vector<32x128xf32>
    %c12 = arith.constant 12 : index
    %c0_52 = arith.constant 0 : index
    %61 = vector.load %arg2[%c12, %c0_52] : memref<18x128xf32, #tpu.memory_space<vmem>>, vector<1x128xf32>
    %62 = vector.broadcast %61 : vector<1x128xf32> to vector<32x128xf32>
    %63 = arith.mulf %60, %62 : vector<32x128xf32>
    %c96_53 = arith.constant 96 : index
    %c0_54 = arith.constant 0 : index
    %64 = vector.load %arg9[%c96_53, %c0_54] : memref<304x128xf32, #tpu.memory_space<vmem>>, vector<32x128xf32>
    tpu.vector_store %arg9[%c96_53, %c0_54], %63 {strides = array<i32>} : memref<304x128xf32, #tpu.memory_space<vmem>>, vector<32x128xf32>,
    %c128_55 = arith.constant 128 : index
    %c0_56 = arith.constant 0 : index
    %65 = vector.load %arg9[%c128_55, %c0_56] : memref<304x128xf32, #tpu.memory_space<vmem>>, vector<32x128xf32>
    tpu.vector_store %arg9[%c128_55, %c0_56], %44 {strides = array<i32>} : memref<304x128xf32, #tpu.memory_space<vmem>>, vector<32x128xf32>,
    %c127_i32 = arith.constant 127 : i32
    %66 = tpu.dynamic_rotate %44 by %c127_i32 dim 1 : vector<32x128xf32>, i32 -> vector<32x128xf32>
    %c14 = arith.constant 14 : index
    %c0_57 = arith.constant 0 : index
    %67 = vector.load %arg2[%c14, %c0_57] : memref<18x128xf32, #tpu.memory_space<vmem>>, vector<1x128xf32>
    %68 = vector.broadcast %67 : vector<1x128xf32> to vector<32x128xf32>
    %69 = arith.mulf %66, %68 : vector<32x128xf32>
    %c160 = arith.constant 160 : index
    %c0_58 = arith.constant 0 : index
    %70 = vector.load %arg9[%c160, %c0_58] : memref<304x128xf32, #tpu.memory_space<vmem>>, vector<32x128xf32>
    tpu.vector_store %arg9[%c160, %c0_58], %69 {strides = array<i32>} : memref<304x128xf32, #tpu.memory_space<vmem>>, vector<32x128xf32>,
    %c121_i32 = arith.constant 121 : i32
    %71 = tpu.dynamic_rotate %44 by %c121_i32 dim 1 : vector<32x128xf32>, i32 -> vector<32x128xf32>
    %c15 = arith.constant 15 : index
    %c0_59 = arith.constant 0 : index
    %72 = vector.load %arg2[%c15, %c0_59] : memref<18x128xf32, #tpu.memory_space<vmem>>, vector<1x128xf32>
    %73 = vector.broadcast %72 : vector<1x128xf32> to vector<32x128xf32>
    %74 = arith.mulf %71, %73 : vector<32x128xf32>
    %c192 = arith.constant 192 : index
    %c0_60 = arith.constant 0 : index
    %75 = vector.load %arg9[%c192, %c0_60] : memref<304x128xf32, #tpu.memory_space<vmem>>, vector<32x128xf32>
    tpu.vector_store %arg9[%c192, %c0_60], %74 {strides = array<i32>} : memref<304x128xf32, #tpu.memory_space<vmem>>, vector<32x128xf32>,
    %c120_i32 = arith.constant 120 : i32
    %76 = tpu.dynamic_rotate %44 by %c120_i32 dim 1 : vector<32x128xf32>, i32 -> vector<32x128xf32>
    %c16_61 = arith.constant 16 : index
    %c0_62 = arith.constant 0 : index
    %77 = vector.load %arg2[%c16_61, %c0_62] : memref<18x128xf32, #tpu.memory_space<vmem>>, vector<1x128xf32>
    %78 = vector.broadcast %77 : vector<1x128xf32> to vector<32x128xf32>
    %79 = arith.mulf %76, %78 : vector<32x128xf32>
    %c224 = arith.constant 224 : index
    %c0_63 = arith.constant 0 : index
    %80 = vector.load %arg9[%c224, %c0_63] : memref<304x128xf32, #tpu.memory_space<vmem>>, vector<32x128xf32>
    tpu.vector_store %arg9[%c224, %c0_63], %79 {strides = array<i32>} : memref<304x128xf32, #tpu.memory_space<vmem>>, vector<32x128xf32>,
    %c119_i32 = arith.constant 119 : i32
    %81 = tpu.dynamic_rotate %44 by %c119_i32 dim 1 : vector<32x128xf32>, i32 -> vector<32x128xf32>
    %c17 = arith.constant 17 : index
    %c0_64 = arith.constant 0 : index
    %82 = vector.load %arg2[%c17, %c0_64] : memref<18x128xf32, #tpu.memory_space<vmem>>, vector<1x128xf32>
    %83 = vector.broadcast %82 : vector<1x128xf32> to vector<32x128xf32>
    %84 = arith.mulf %81, %83 : vector<32x128xf32>
    %c256 = arith.constant 256 : index
    %c0_65 = arith.constant 0 : index
    %85 = vector.load %arg9[%c256, %c0_65] : memref<304x128xf32, #tpu.memory_space<vmem>>, vector<32x128xf32>
    tpu.vector_store %arg9[%c256, %c0_65], %84 {strides = array<i32>} : memref<304x128xf32, #tpu.memory_space<vmem>>, vector<32x128xf32>,
    %c0_66 = arith.constant 0 : index
    %c0_67 = arith.constant 0 : index
    %c0_68 = arith.constant 0 : index
    %c0_69 = arith.constant 0 : index
    %86 = vector.load %arg1[%c0_66, %c0_67, %c0_68, %c0_69] : memref<1x4x16x128xf32, #tpu.memory_space<vmem>>, vector<1x1x16x128xf32>
    %87 = vector.shape_cast %86 : vector<1x1x16x128xf32> to vector<16x128xf32>
    %c288 = arith.constant 288 : index
    %c0_70 = arith.constant 0 : index
    %88 = vector.load %arg9[%c288, %c0_70] : memref<304x128xf32, #tpu.memory_space<vmem>>, vector<16x128xf32>
    tpu.vector_store %arg9[%c288, %c0_70], %87 {strides = array<i32>} : memref<304x128xf32, #tpu.memory_space<vmem>>, vector<16x128xf32>,
    %c0_71 = arith.constant 0 : index
    %c0_72 = arith.constant 0 : index
    %89 = vector.load %arg5[%c0_71, %c0_72] : memref<32x304xf32, #tpu.memory_space<vmem>>, vector<32x304xf32>
    %c0_73 = arith.constant 0 : index
    %c0_74 = arith.constant 0 : index
    %90 = vector.load %arg9[%c0_73, %c0_74] : memref<304x128xf32, #tpu.memory_space<vmem>>, vector<304x128xf32>
    %cst_75 = arith.constant dense<0.000000e+00> : vector<32x128xf32>
    %91 = tpu.matmul %89, %90, %cst_75 {dimension_numbers = #tpu.dot_dimension_numbers<[1], [0], [0], [1], [0, 0, 1, 1], [], []>} : vector<32x304xf32>, vector<304x128xf32>, vector<32x128xf32> -> vector<32x128xf32>
    %c0_76 = arith.constant 0 : index
    %c0_77 = arith.constant 0 : index
    %92 = vector.load %arg6[%c0_76, %c0_77] : memref<32x1xf32, #tpu.memory_space<vmem>>, vector<32x1xf32>
    %93 = vector.broadcast %92 : vector<32x1xf32> to vector<32x128xf32>
    %94 = arith.addf %91, %93 : vector<32x128xf32>
    %cst_78 = arith.constant 0.000000e+00 : f32
    %95 = vector.broadcast %cst_78 : f32 to vector<32x128xf32>
    %96 = arith.maximumf %94, %95 : vector<32x128xf32>
    %c0_79 = arith.constant 0 : index
    %c0_80 = arith.constant 0 : index
    %c0_81 = arith.constant 0 : index
    %97 = vector.load %arg7[%c0_79, %c0_80, %c0_81] : memref<1x32x128xf32, #tpu.memory_space<vmem>>, vector<1x32x128xf32>
    %98 = vector.shape_cast %97 : vector<1x32x128xf32> to vector<32x128xf32>
    %99 = vector.shape_cast %96 : vector<32x128xf32> to vector<1x32x128xf32>
    tpu.vector_store %arg7[%c0_79, %c0_80, %c0_81], %99 {strides = array<i32>} : memref<1x32x128xf32, #tpu.memory_space<vmem>>, vector<1x32x128xf32>,
    return
  }
  func.func @transform_0(%arg0: i32) -> (i32, i32, i32, i32) {
    %c0_i32 = arith.constant 0 : i32
    %c0_i32_0 = arith.constant 0 : i32
    %c0_i32_1 = arith.constant 0 : i32
    %c0_i32_2 = arith.constant 0 : i32
    return %arg0, %c0_i32, %c0_i32_0, %c0_i32_1 : i32, i32, i32, i32
  }
  func.func @transform_1(%arg0: i32) -> (i32, i32) {
    %c0_i32 = arith.constant 0 : i32
    %c0_i32_0 = arith.constant 0 : i32
    %c0_i32_1 = arith.constant 0 : i32
    return %c0_i32, %c0_i32_0 : i32, i32
  }
  func.func @transform_2(%arg0: i32) -> (i32, i32) {
    %c0_i32 = arith.constant 0 : i32
    %c0_i32_0 = arith.constant 0 : i32
    %c0_i32_1 = arith.constant 0 : i32
    return %c0_i32, %c0_i32_0 : i32, i32
  }
  func.func @transform_3(%arg0: i32) -> (i32, i32) {
    %c0_i32 = arith.constant 0 : i32
    %c0_i32_0 = arith.constant 0 : i32
    %c0_i32_1 = arith.constant 0 : i32
    return %c0_i32, %c0_i32_0 : i32, i32
  }
  func.func @transform_4(%arg0: i32) -> (i32, i32) {
    %c0_i32 = arith.constant 0 : i32
    %c0_i32_0 = arith.constant 0 : i32
    %c0_i32_1 = arith.constant 0 : i32
    return %c0_i32, %c0_i32_0 : i32, i32
  }
  func.func @transform_5(%arg0: i32) -> (i32, i32) {
    %c0_i32 = arith.constant 0 : i32
    %c0_i32_0 = arith.constant 0 : i32
    %c0_i32_1 = arith.constant 0 : i32
    return %c0_i32, %c0_i32_0 : i32, i32
  }
  func.func @transform_6(%arg0: i32) -> (i32, i32, i32) {
    %c0_i32 = arith.constant 0 : i32
    %c0_i32_0 = arith.constant 0 : i32
    %c0_i32_1 = arith.constant 0 : i32
    return %arg0, %c0_i32, %c0_i32_0 : i32, i32, i32
  }
}

</mosaic_0001>

<bundles_post_ra>
// kernel: tile.9
= control target key start
LH: loop header
LB: loop body
LE: loop exit
PB: predicated region body
PF: predicated region fallthrough
CT: control target
= control target key end

     0   :  { %vm92_vm0 = vcmask 1047556   ;;  %vm94_vm1 = vcmask 523264   ;;  %s106_s13 = smov 3  ;;  %s178_s14 = smov 64   ;;  %vm119_vm2 = vcmask 1048064   ;;  %s268_s0 = inlined_call_operand.vmem [shape: f32[18,2,64], index: 0, kind: input, shape index: {}]   ;;  %s269_s1 = inlined_call_operand.vmem [shape: f32[18,128], index: 1, kind: output, shape index: {}]  }
   0x1   :  { %v166_v0 = vld [vmem:[%s268_s0 + $0xe] sm:$0x3]  ;;  %v167_v1 = vld [vmem:[%s268_s0 + $0xc] sm:$0x3]  ;;  %v168_v2 = vld [vmem:[%s268_s0 + $0xa] sm:$0x3] }
   0x2   :  { %58 = vst [vmem:[#allocation0 + $0x38] sm:$0x3] %v166_v0  ;;  %63 = vst [vmem:[#allocation0 + $0x30] sm:$0x3] %v167_v1  ;;  %v169_v3 = vld [vmem:[%s268_s0 + $0x8] sm:$0x3] }
   0x3   :  { %68 = vst [vmem:[#allocation0 + $0x28] sm:$0x3] %v168_v2  ;;  %v170_v4 = vld [vmem:[%s268_s0 + $0x6] sm:$0x3]  ;;  %v171_v5 = vld [vmem:[%s268_s0 + $0x4] sm:$0x3] }
   0x4   :  { %73 = vst [vmem:[#allocation0 + $0x20] sm:$0x3] %v169_v3  ;;  %78 = vst [vmem:[#allocation0 + $0x18] sm:$0x3] %v170_v4  ;;  %v172_v6 = vld [vmem:[%s268_s0 + $0x2] sm:$0x3] }
   0x5   :  { %83 = vst [vmem:[#allocation0 + $0x10] sm:$0x3] %v171_v5  ;;  %v88_v7 = vld [vmem:[%s268_s0] sm:$0x3]  ;;  %87 = vst [vmem:[#allocation0 + $0x8] sm:$0x3] %v172_v6 }
   0x6   :  { %89 = vst [vmem:[#allocation0] sm:$0x3] %v88_v7  ;;  %v158_v8 = vld [vmem:[%s268_s0 + $0x1e] sm:$0x3]  ;;  %v159_v9 = vld [vmem:[%s268_s0 + $0x1c] sm:$0x3] }
   0x7   :  { %v160_v10 = vld [vmem:[%s268_s0 + $0x1a] sm:$0x3]  ;;  %18 = vst [vmem:[#allocation0 + $0x78] sm:$0x3] %v158_v8  ;;  %23 = vst [vmem:[#allocation0 + $0x70] sm:$0x3] %v159_v9 }
   0x8   :  { %28 = vst [vmem:[#allocation0 + $0x68] sm:$0x3] %v160_v10  ;;  %v161_v11 = vld [vmem:[%s268_s0 + $0x18] sm:$0x3]  ;;  %v162_v12 = vld [vmem:[%s268_s0 + $0x16] sm:$0x3] }
   0x9   :  { %v163_v13 = vld [vmem:[%s268_s0 + $0x14] sm:$0x3]  ;;  %33 = vst [vmem:[#allocation0 + $0x60] sm:$0x3] %v161_v11  ;;  %38 = vst [vmem:[#allocation0 + $0x58] sm:$0x3] %v162_v12 }
   0xa   :  { %43 = vst [vmem:[#allocation0 + $0x50] sm:$0x3] %v163_v13  ;;  %v164_v14 = vld [vmem:[%s268_s0 + $0x12] sm:$0x3]  ;;  %v165_v15 = vld [vmem:[%s268_s0 + $0x10] sm:$0x3] }
   0xb   :  { %v156_v16 = vld [vmem:[%s268_s0 + $0x22] sm:$0x3]  ;;  %48 = vst [vmem:[#allocation0 + $0x48] sm:$0x3] %v164_v14  ;;  %53 = vst [vmem:[#allocation0 + $0x40] sm:$0x3] %v165_v15 }
   0xc   :  { %8 = vst [vmem:[#allocation0 + $0x88] sm:$0x3] %v156_v16  ;;  %v157_v17 = vld [vmem:[%s268_s0 + $0x20] sm:$0x3]  ;;  %s133_s0 = smov 3 }
   0xd   :  { %13 = vst [vmem:[#allocation0 + $0x80] sm:$0x3] %v157_v17  ;;  %v114_v18 = vld [vmem:[#allocation0 + $0x1] ss:$8 sm:$0xf0]  }
   0xe   :  { %v91_v19 = vld [vmem:[#allocation0] ss:$8 sm:$0xf0]   ;;  %v112_v20 = vld [vmem:[#allocation0 + $0x1] ss:$8 sm:$0xf]  }
   0xf   :  { %v90_v21 = vld [vmem:[#allocation0] ss:$8 sm:$0xf]   ;;  %v116_v22 = vsel %vm92_vm0, %v114_v18, %v112_v20 }
  0x10   :  { %v93_v23 = vsel %vm92_vm0, %v91_v19, %v90_v21  ;;  %117 = vrot.lane.b32.xlu0 %v116_v22, %s178_s14  ;;  %v124_v24 = vld [vmem:[#allocation0 + $0x41] ss:$8 sm:$0xf0]   ;;  %v99_v25 = vld [vmem:[#allocation0 + $0x40] ss:$8 sm:$0xf0]  }
  0x11   :  { %95 = vst.msk [vmem:[%s269_s1] sm:$0xff] %vm94_vm1, %v93_v23  }
  0x12   :  { %v122_v26 = vld [vmem:[#allocation0 + $0x41] ss:$8 sm:$0xf]   ;;  %v97_v27 = vld [vmem:[#allocation0 + $0x40] ss:$8 sm:$0xf]  }
  0x13   :  { %v126_v28 = vsel %vm92_vm0, %v124_v24, %v122_v26  ;;  %v101_v30 = vsel %vm92_vm0, %v99_v25, %v97_v27 }
  0x14   :  { %v134_v29 = vld [vmem:[#allocation0 + $0x81] ss:$8 sm:%s133_s0]   ;;  %v107_v31 = vld [vmem:[#allocation0 + $0x80] ss:$8 sm:%s106_s13]   ;;  %173 = vst.msk [vmem:[%s269_s1 + $0x8] sm:$0xff] %vm94_vm1, %v101_v30   ;;  %127 = vrot.lane.b32.xlu0 %v126_v28, %s178_s14 }
  0x15   :  { %135 = vrot.lane.b32.xlu1 %v134_v29, %s178_s14  ;;  %174 = vst.msk [vmem:[%s269_s1 + $0x10] sm:$0x3] %vm94_vm1, %v107_v31  }
  0x82   :  { %v118_v32 = vpop.permute.xlu0 %117  }
  0x83   :  { %120 = vst.msk [vmem:[%s269_s1] sm:$0xff] %vm119_vm2, %v118_v32  }
  0x86   :  { %v128_v34 = vpop.permute.xlu0 %127  }
  0x87   :  { %v136_v33 = vpop.permute.xlu1 %135   ;;  %175 = vst.msk [vmem:[%s269_s1 + $0x8] sm:$0xff] %vm119_vm2, %v128_v34  }
  0x88   :  { %176 = vst.msk [vmem:[%s269_s1 + $0x10] sm:$0x3] %vm119_vm2, %v136_v33  }

// kernel: _forward_impl.1
= control target key start
LH: loop header
LB: loop body
LE: loop exit
PB: predicated region body
PF: predicated region fallthrough
CT: control target
= control target key end

     0   :  { %v886_v3 = vmov 0.0|0.0   ;;  %s887_s27 = smov 9   ;;  %s888_s28 = smov 8   ;;  %vm157_vm0 = vcmask 130048   ;;  %v890_v11 = vmov 0   ;;  %vm509_vm1 = vcmask 392192   ;;  %s1171_s0 = inlined_call_operand.vmem [shape: f32[1,4,16,128], index: 0, kind: input, shape index: {}]   ;;  %s1172_s2 = inlined_call_operand.vmem [shape: f32[32,144], index: 2, kind: input, shape index: {}]   ;;  %s1173_s3 = inlined_call_operand.vmem [shape: f32[32,1], index: 3, kind: input, shape index: {}]   ;;  %s1174_s1 = inlined_call_operand.vmem [shape: f32[18,128], index: 1, kind: input, shape index: {}]   ;;  %s1175_s4 = inlined_call_operand.vmem [shape: f32[32,304], index: 4, kind: input, shape index: {}]   ;;  %s1176_s5 = inlined_call_operand.vmem [shape: f32[32,1], index: 5, kind: input, shape index: {}]   ;;  %s1177_s6 = inlined_call_operand.vmem [shape: f32[1,32,128], index: 6, kind: output, shape index: {}]  }
   0x1   :  { %v934_v0 = vld [vmem:[%s1171_s0 + $0x30] sm:$0xff]  ;;  %v939_v1 = vld [vmem:[%s1171_s0 + $0x20] sm:$0xff]  ;;  %v944_v2 = vld [vmem:[%s1171_s0 + $0x28] sm:$0xff]  ;;  %803 = vmatprep.subr.bf16.mxu0 %v886_v3  ;;  %s889_s11 = smov 1   ;;  %885 = vset.pattern.permute.xlu1 %v890_v11  ;;  %s891_s29 = smov 127  }
   0x2   :  { %34 = vrot.lane.b32.xlu0 %v934_v0, %s887_s27  ;;  %47 = vrot.lane.b32.xlu1 %v939_v1, %s888_s28  ;;  %v825_v4 = vpack.c.bf16 %v944_v2, %v939_v1  ;;  %v956_v5 = vld [vmem:[%s1171_s0 + $0x38] sm:$0xff]  ;;  %v966_v7 = vld [vmem:[%s1171_s0 + $0x10] sm:$0xff]  ;;  %s894_s30 = smov 120  }
   0x3   :  { %v961_v6 = vld [vmem:[%s1171_s0 + $0x18] sm:$0xff]  ;;  %v828_v9 = vpack.c.bf16 %v956_v5, %v934_v0  ;;  %v108_v10 = vld [vmem:[%s1172_s2 + $0x8] sm:$0xff]  ;;  %884 = vset.pattern.permute.xlu0 %v890_v11  ;;  %v133_v13 = vld [vmem:[%s1173_s3] sm:$0xff] }
   0x4   :  { %v819_v8 = vpack.c.bf16 %v961_v6, %v966_v7  ;;  %715 = vmatprep.mubr.msk.f32.mxu0 %vm157_vm0, %v108_v10  ;;  %v134_v12 = vld [vmem:[%s1173_s3 + $0x8] sm:$0xff]  ;;  %v135_v14 = vld [vmem:[%s1173_s3 + $0x10] sm:$0xff]  ;;  %v136_v15 = vld [vmem:[%s1173_s3 + $0x18] sm:$0xff]  ;;  %s893_s3 = smov 7  }
   0x5   :  { %v710_v18 = vld [vmem:[%s1174_s1] ss:$0 sm:$0xff]  ;;  %v711_v19 = vld [vmem:[%s1174_s1 + $0x1] ss:$0 sm:$0xff]  ;;  %v712_v24 = vld [vmem:[%s1174_s1 + $0x2] ss:$0 sm:$0xff] }
   0x6   :  { %36 = vrot.lane.b32.xlu0 %v956_v5, %s887_s27  ;;  %49 = vrot.lane.b32.xlu1 %v944_v2, %s888_s28  ;;  %v713_v32 = vld [vmem:[%s1174_s1 + $0x3] ss:$0 sm:$0xff]  ;;  %v24_v41 = vld [vmem:[%s1171_s0 + $0x8] sm:$0xff] }
   0x7   :  { %v23_v40 = vld [vmem:[%s1171_s0] sm:$0xff]  ;;  %v110_v50 = vld [vmem:[%s1172_s2 + $0x18] sm:$0xff]  ;;  %v109_v51 = vld [vmem:[%s1172_s2 + $0x10] sm:$0xff] }
   0x8   :  { %v1025_v42 = vpack.c.bf16 %v24_v41, %v23_v40  ;;  %v714_v43 = vld [vmem:[%s1174_s1 + $0x6] ss:$0 sm:$0xff]  ;;  %v112_v52 = vld [vmem:[%s1172_s2 + $0x28] sm:$0xff]  ;;  %v114_v54 = vld [vmem:[%s1172_s2 + $0x38] sm:$0xff] }
   0x9   :  { %v107_v49 = vld [vmem:[%s1172_s2] sm:$0xff]  ;;  %v113_v55 = vld [vmem:[%s1172_s2 + $0x30] sm:$0xff] }
   0xa   :  { %60 = vrot.lane.b32.xlu0 %v934_v0, %s888_s28  ;;  %62 = vrot.lane.b32.xlu1 %v956_v5, %s888_s28  ;;  %v111_v53 = vld [vmem:[%s1172_s2 + $0x20] sm:$0xff]  ;;  %s892_s2 = smov 121  }
   0xe   :  { %75 = vrot.lane.b32.xlu1 %v961_v6, %s889_s11  ;;  %73 = vrot.lane.b32.xlu0 %v966_v7, %s889_s11 }
  0x12   :  { %92 = vrot.lane.b32.xlu1 %v956_v5, %s889_s11  ;;  %90 = vrot.lane.b32.xlu0 %v934_v0, %s889_s11 }
  0x16   :  { %144 = vperm.xlu1 %885, %v134_v12   ;;  %139 = vperm.xlu0 %884, %v133_v13  }
  0x1a   :  { %149 = vperm.xlu1 %885, %v135_v14   ;;  %154 = vperm.xlu0 %884, %v136_v15   ;;  %v436_v14 = vld [vmem:[%s1175_s4 + $0x8] sm:$0xff]  ;;  %v485_v15 = vld [vmem:[%s1176_s5] sm:$0xff] }
  0x1b   :  { %586 = vmatprep.mubr.f32.mxu1 %v436_v14 }
  0x74   :  { %v35_v16 = vpop.permute.xlu0 %34  ;;  %v48_v17 = vpop.permute.xlu1 %47 }
  0x75   :  { %v43_v22 = vmul.f32 %v710_v18, %v35_v16  ;;  %v56_v25 = vmul.f32 %v711_v19, %v48_v17  ;;  %v486_v16 = vld [vmem:[%s1176_s5 + $0x8] sm:$0xff]  ;;  %v487_v17 = vld [vmem:[%s1176_s5 + $0x10] sm:$0xff] }
  0x78   :  { %v37_v20 = vpop.permute.xlu0 %36  ;;  %v50_v21 = vpop.permute.xlu1 %49 }
  0x79   :  { %v44_v23 = vmul.f32 %v710_v18, %v37_v20  ;;  %v57_v26 = vmul.f32 %v711_v19, %v50_v21  ;;  %v488_v18 = vld [vmem:[%s1176_s5 + $0x18] sm:$0xff]  ;;  %v719_v20 = vld [vmem:[%s1174_s1 + $0x9] ss:$0 sm:$0xff] }
  0x7b   :  { %v804_v27 = vpack.c.bf16 %v44_v23, %v43_v22  ;;  %v807_v33 = vpack.c.bf16 %v57_v26, %v56_v25 }
  0x7c   :  { %v61_v28 = vpop.permute.xlu0 %60  ;;  %v63_v29 = vpop.permute.xlu1 %62 }
  0x7d   :  { %805 = vmatpush1.bf16.msra.mxu0 %v804_v27  ;;  %v69_v30 = vmul.f32 %v712_v24, %v61_v28  ;;  %v70_v31 = vmul.f32 %v712_v24, %v63_v29 }
  0x7e   :  { %806 = vmatprep.subr.bf16.mxu0 %v886_v3 }
  0x7f   :  { %v810_v36 = vpack.c.bf16 %v70_v31, %v69_v30 }
  0x80   :  { %v76_v34 = vpop.permute.xlu1 %75  ;;  %v74_v35 = vpop.permute.xlu0 %73 }
  0x81   :  { %808 = vmatpush1.bf16.msra.mxu0 %v807_v33  ;;  %v83_v37 = vmul.f32 %v713_v32, %v76_v34  ;;  %v82_v38 = vmul.f32 %v713_v32, %v74_v35 }
  0x82   :  { %809 = vmatprep.subr.bf16.mxu0 %v886_v3 }
  0x83   :  { %v813_v39 = vpack.c.bf16 %v83_v37, %v82_v38  ;;  %v723_v38 = vld [vmem:[%s1174_s1 + $0xe] ss:$0 sm:$0xff] }
  0x84   :  { %v93_v44 = vpop.permute.xlu1 %92  ;;  %v91_v45 = vpop.permute.xlu0 %90 }
  0x85   :  { %811 = vmatpush1.bf16.msra.mxu0 %v810_v36  ;;  %v100_v46 = vmul.f32 %v714_v43, %v93_v44  ;;  %v99_v47 = vmul.f32 %v714_v43, %v91_v45 }
  0x86   :  { %812 = vmatprep.subr.bf16.mxu0 %v886_v3 }
  0x87   :  { %v822_v48 = vpack.c.bf16 %v100_v46, %v99_v47  ;;  %v720_v46 = vld [vmem:[%s1174_s1 + $0xa] ss:$0 sm:$0xff] }
  0x89   :  { %814 = vmatpush1.bf16.msra.mxu0 %v813_v39 }
  0x8a   :  { %815 = vmatprep.subr.bf16.mxu0 %v886_v3 }
  0x8d   :  { %817 = vmatpush1.bf16.msra.mxu0 %v1025_v42 }
  0x8e   :  { %818 = vmatprep.subr.bf16.mxu0 %v886_v3 }
  0x91   :  { %820 = vmatpush1.bf16.msra.mxu0 %v819_v8 }
  0x92   :  { %821 = vmatprep.subr.bf16.mxu0 %v886_v3 }
  0x95   :  { %823 = vmatpush1.bf16.msra.mxu0 %v822_v48  ;;  %v140_v56 = vpop.permute.xlu0 %139  ;;  %v145_v61 = vpop.permute.xlu1 %144 }
  0x96   :  { %824 = vmatprep.subr.bf16.mxu0 %v886_v3 }
  0x99   :  { %826 = vmatpush1.bf16.msra.mxu0 %v825_v4  ;;  %v150_v5 = vpop.permute.xlu1 %149  ;;  %v155_v7 = vpop.permute.xlu0 %154 }
  0x9a   :  { %827 = vmatprep.subr.bf16.mxu0 %v886_v3 }
  0x9d   :  { %829 = vmatpush1.bf16.msra.mxu0 %v828_v9 }
  0xa0   :  { %235 = vmatmul.mubr.f32.vlgmr.msra.gmra.mrb[0].mxu0 %v107_v49 }
  0xa1   :  { %716 = vmatprep.mubr.msk.f32.mxu0 %vm157_vm0, %v110_v50 }
  0xa4   :  { %240 = vmatmul.mubr.f32.gmra.mrb[2].mxu0 %v109_v51 }
  0xa5   :  { %717 = vmatprep.mubr.msk.f32.mxu0 %vm157_vm0, %v112_v52 }
  0xa8   :  { %245 = vmatmul.mubr.f32.gmra.mrb[4].mxu0 %v111_v53 }
  0xa9   :  { %718 = vmatprep.mubr.msk.f32.mxu0 %vm157_vm0, %v114_v54 }
  0xac   :  { %250 = vmatmul.mubr.f32.gmra.mrb[6].mxu0 %v113_v55 }
 0x173   :  { %v236_v57 = vpop.f32.mrb[0].mxu0 }
 0x174   :  { %v237_v58 = vadd.f32 %v236_v57, %v140_v56  ;;  %v238_v59 = vpop.f32.mrb[1].mxu0  ;;  %v724_v56 = vld [vmem:[%s1174_s1 + $0xf] ss:$0 sm:$0xff] }
 0x176   :  { %v255_v60 = vmax.f32 %v237_v58, 0.0 }
 0x177   :  { %v241_v62 = vpop.f32.mrb[2].mxu0 }
 0x178   :  { %v242_v63 = vadd.f32 %v241_v62, %v145_v61  ;;  %v243_v0 = vpop.f32.mrb[3].mxu0  ;;  %259 = vrot.lane.b32.xlu1 %v255_v60, %s887_s27 }
 0x179   :  { %v721_v0 = vld [vmem:[%s1174_s1 + $0xb] ss:$0 sm:$0xff] }
 0x17a   :  { %v256_v1 = vmax.f32 %v242_v63, 0.0 }
 0x17b   :  { %v246_v2 = vpop.f32.mrb[4].mxu0 }
 0x17c   :  { %261 = vrot.lane.b32.xlu0 %v256_v1, %s887_s27  ;;  %347 = vrot.lane.b32.xlu1 %v255_v60, %s891_s29  ;;  %v248_v3 = vpop.f32.mrb[5].mxu0  ;;  %v830_v4 = vpack.c.bf16 %v256_v1, %v255_v60  ;;  %v247_v6 = vadd.f32 %v246_v2, %v150_v5 }
 0x17e   :  { %831 = vmatprep.subr.bf16.mxu1 %v830_v4  ;;  %v257_v11 = vmax.f32 %v247_v6, 0.0 }
 0x17f   :  { %v251_v8 = vpop.f32.mrb[6].mxu0 }
 0x180   :  { %v252_v9 = vadd.f32 %v251_v8, %v155_v7  ;;  %349 = vrot.lane.b32.xlu0 %v256_v1, %s891_s29  ;;  %280 = vrot.lane.b32.xlu1 %v255_v60, %s888_s28  ;;  %v253_v10 = vpop.f32.mrb[7].mxu0 }
 0x181   :  { %v725_v10 = vld [vmem:[%s1174_s1 + $0x10] ss:$0 sm:$0xff] }
 0x182   :  { %v258_v12 = vmax.f32 %v252_v9, 0.0 }
 0x184   :  { %282 = vrot.lane.b32.xlu0 %v256_v1, %s888_s28  ;;  %368 = vrot.lane.b32.xlu1 %v255_v60, %s892_s2  ;;  %v834_v13 = vpack.c.bf16 %v258_v12, %v257_v11 }
 0x188   :  { %370 = vrot.lane.b32.xlu0 %v256_v1, %s892_s2  ;;  %301 = vrot.lane.b32.xlu1 %v255_v60, %s893_s3 }
 0x18c   :  { %303 = vrot.lane.b32.xlu0 %v256_v1, %s893_s3  ;;  %389 = vrot.lane.b32.xlu1 %v255_v60, %s894_s30 }
 0x190   :  { %391 = vrot.lane.b32.xlu0 %v256_v1, %s894_s30  ;;  %322 = vrot.lane.b32.xlu1 %v255_v60, %s889_s11 }
 0x194   :  { %324 = vrot.lane.b32.xlu0 %v256_v1, %s889_s11  ;;  %263 = vrot.lane.b32.xlu1 %v257_v11, %s887_s27 }
 0x198   :  { %265 = vrot.lane.b32.xlu0 %v258_v12, %s887_s27  ;;  %351 = vrot.lane.b32.xlu1 %v257_v11, %s891_s29  ;;  %s895_s27 = smov 119  }
 0x19c   :  { %353 = vrot.lane.b32.xlu0 %v258_v12, %s891_s29  ;;  %284 = vrot.lane.b32.xlu1 %v257_v11, %s888_s28 }
 0x1a0   :  { %286 = vrot.lane.b32.xlu0 %v258_v12, %s888_s28  ;;  %372 = vrot.lane.b32.xlu1 %v257_v11, %s892_s2 }
 0x1a4   :  { %374 = vrot.lane.b32.xlu0 %v258_v12, %s892_s2  ;;  %305 = vrot.lane.b32.xlu1 %v257_v11, %s893_s3 }
 0x1a8   :  { %307 = vrot.lane.b32.xlu0 %v258_v12, %s893_s3  ;;  %393 = vrot.lane.b32.xlu1 %v257_v11, %s894_s30 }
 0x1ac   :  { %395 = vrot.lane.b32.xlu0 %v258_v12, %s894_s30  ;;  %326 = vrot.lane.b32.xlu1 %v257_v11, %s889_s11 }
 0x1b0   :  { %328 = vrot.lane.b32.xlu0 %v258_v12, %s889_s11  ;;  %410 = vrot.lane.b32.xlu1 %v255_v60, %s895_s27 }
 0x1b4   :  { %412 = vrot.lane.b32.xlu0 %v256_v1, %s895_s27  ;;  %414 = vrot.lane.b32.xlu1 %v257_v11, %s895_s27 }
 0x1b8   :  { %416 = vrot.lane.b32.xlu0 %v258_v12, %s895_s27  ;;  %491 = vperm.xlu1 %885, %v485_v15  }
 0x1bc   :  { %496 = vperm.xlu0 %884, %v486_v16   ;;  %501 = vperm.xlu1 %885, %v487_v17  }
 0x1c0   :  { %506 = vperm.xlu0 %884, %v488_v18   ;;  %v722_v18 = vld [vmem:[%s1174_s1 + $0xc] ss:$0 sm:$0xff] }
 0x1ea   :  { %v260_v19 = vpop.permute.xlu1 %259 }
 0x1eb   :  { %v272_v23 = vmul.f32 %v719_v20, %v260_v19 }
 0x1ee   :  { %v262_v21 = vpop.permute.xlu0 %261  ;;  %v348_v22 = vpop.permute.xlu1 %347 }
 0x1ef   :  { %v273_v24 = vmul.f32 %v719_v20, %v262_v21  ;;  %v360_v45 = vmul.f32 %v723_v38, %v348_v22 }
 0x1f1   :  { %v832_v25 = vpack.c.bf16 %v273_v24, %v272_v23 }
 0x1f2   :  { %v350_v26 = vpop.permute.xlu0 %349  ;;  %v281_v27 = vpop.permute.xlu1 %280 }
 0x1f3   :  { %833 = vmatpush3.bf16.msra.mxu1 %v832_v25  ;;  %v361_v39 = vmul.f32 %v723_v38, %v350_v26  ;;  %v293_v52 = vmul.f32 %v720_v46, %v281_v27 }
 0x1f4   :  { %835 = vmatprep.subr.bf16.mxu1 %v834_v13 }
 0x1f5   :  { %v838_v49 = vpack.c.bf16 %v361_v39, %v360_v45 }
 0x1f6   :  { %v283_v28 = vpop.permute.xlu0 %282  ;;  %v369_v29 = vpop.permute.xlu1 %368 }
 0x1f7   :  { %v294_v47 = vmul.f32 %v720_v46, %v283_v28  ;;  %v381_v63 = vmul.f32 %v724_v56, %v369_v29 }
 0x1f9   :  { %v840_v55 = vpack.c.bf16 %v294_v47, %v293_v52  ;;  %v442_v47 = vld [vmem:[%s1175_s4 + $0x38] sm:$0xff]  ;;  %v437_v52 = vld [vmem:[%s1175_s4 + $0x10] sm:$0xff] }
 0x1fa   :  { %v371_v30 = vpop.permute.xlu0 %370  ;;  %v302_v31 = vpop.permute.xlu1 %301 }
 0x1fb   :  { %v382_v58 = vmul.f32 %v724_v56, %v371_v30  ;;  %v314_v6 = vmul.f32 %v721_v0, %v302_v31 }
 0x1fd   :  { %v846_v3 = vpack.c.bf16 %v382_v58, %v381_v63 }
 0x1fe   :  { %v304_v32 = vpop.permute.xlu0 %303  ;;  %v390_v33 = vpop.permute.xlu1 %389 }
 0x1ff   :  { %v315_v1 = vmul.f32 %v721_v0, %v304_v32  ;;  %v402_v17 = vmul.f32 %v725_v10, %v390_v33  ;;  %v726_v33 = vld [vmem:[%s1174_s1 + $0x11] ss:$0 sm:$0xff] }
 0x201   :  { %v848_v9 = vpack.c.bf16 %v315_v1, %v314_v6 }
 0x202   :  { %v392_v34 = vpop.permute.xlu0 %391  ;;  %v323_v35 = vpop.permute.xlu1 %322 }
 0x203   :  { %v403_v12 = vmul.f32 %v725_v10, %v392_v34  ;;  %v335_v24 = vmul.f32 %v722_v18, %v323_v35 }
 0x205   :  { %v854_v21 = vpack.c.bf16 %v403_v12, %v402_v17 }
 0x206   :  { %v325_v36 = vpop.permute.xlu0 %324  ;;  %v264_v37 = vpop.permute.xlu1 %263 }
 0x207   :  { %v274_v43 = vmul.f32 %v719_v20, %v264_v37  ;;  %v336_v19 = vmul.f32 %v722_v18, %v325_v36 }
 0x209   :  { %v856_v27 = vpack.c.bf16 %v336_v19, %v335_v24 }
 0x20a   :  { %v266_v40 = vpop.permute.xlu0 %265  ;;  %v352_v41 = vpop.permute.xlu1 %351 }
 0x20b   :  { %v275_v44 = vmul.f32 %v719_v20, %v266_v40  ;;  %v362_v53 = vmul.f32 %v723_v38, %v352_v41  ;;  %v439_v40 = vld [vmem:[%s1175_s4 + $0x20] sm:$0xff] }
 0x20d   :  { %v836_v48 = vpack.c.bf16 %v275_v44, %v274_v43 }
 0x20e   :  { %v354_v50 = vpop.permute.xlu0 %353  ;;  %v285_v51 = vpop.permute.xlu1 %284 }
 0x20f   :  { %v363_v54 = vmul.f32 %v723_v38, %v354_v50  ;;  %837 = vmatpush3.bf16.msra.mxu1 %v836_v48  ;;  %v295_v61 = vmul.f32 %v720_v46, %v285_v51  ;;  %v435_v38 = vld [vmem:[%s1175_s4] sm:$0xff]  ;;  %v445_v50 = vld [vmem:[%s1175_s4 + $0x50] sm:$0xff]  ;;  %v444_v51 = vld [vmem:[%s1175_s4 + $0x48] sm:$0xff] }
 0x210   :  { %839 = vmatprep.subr.bf16.mxu1 %v838_v49  ;;  %v441_v49 = vld [vmem:[%s1175_s4 + $0x30] sm:$0xff] }
 0x211   :  { %v842_v57 = vpack.c.bf16 %v363_v54, %v362_v53  ;;  %v440_v53 = vld [vmem:[%s1175_s4 + $0x28] sm:$0xff]  ;;  %v443_v54 = vld [vmem:[%s1175_s4 + $0x40] sm:$0xff] }
 0x212   :  { %v287_v59 = vpop.permute.xlu0 %286  ;;  %v373_v60 = vpop.permute.xlu1 %372 }
 0x213   :  { %v296_v62 = vmul.f32 %v720_v46, %v287_v59  ;;  %841 = vmatpush3.bf16.msra.mxu1 %v840_v55  ;;  %v383_v7 = vmul.f32 %v724_v56, %v373_v60  ;;  %v438_v46 = vld [vmem:[%s1175_s4 + $0x18] sm:$0xff] }
 0x214   :  { %843 = vmatprep.subr.bf16.mxu1 %v842_v57 }
 0x215   :  { %v844_v2 = vpack.c.bf16 %v296_v62, %v295_v61 }
 0x216   :  { %v375_v4 = vpop.permute.xlu0 %374  ;;  %v306_v5 = vpop.permute.xlu1 %305 }
 0x217   :  { %v384_v8 = vmul.f32 %v724_v56, %v375_v4  ;;  %845 = vmatpush3.bf16.msra.mxu1 %v844_v2  ;;  %v316_v15 = vmul.f32 %v721_v0, %v306_v5 }
 0x218   :  { %847 = vmatprep.subr.bf16.mxu1 %v846_v3 }
 0x219   :  { %v850_v11 = vpack.c.bf16 %v384_v8, %v383_v7 }
 0x21a   :  { %v308_v13 = vpop.permute.xlu0 %307  ;;  %v394_v14 = vpop.permute.xlu1 %393 }
 0x21b   :  { %v317_v16 = vmul.f32 %v721_v0, %v308_v13  ;;  %849 = vmatpush3.bf16.msra.mxu1 %v848_v9  ;;  %v404_v25 = vmul.f32 %v725_v10, %v394_v14 }
 0x21c   :  { %851 = vmatprep.subr.bf16.mxu1 %v850_v11 }
 0x21d   :  { %v852_v20 = vpack.c.bf16 %v317_v16, %v316_v15 }
 0x21e   :  { %v396_v22 = vpop.permute.xlu0 %395  ;;  %v327_v23 = vpop.permute.xlu1 %326 }
 0x21f   :  { %v405_v26 = vmul.f32 %v725_v10, %v396_v22  ;;  %853 = vmatpush3.bf16.msra.mxu1 %v852_v20  ;;  %v337_v31 = vmul.f32 %v722_v18, %v327_v23 }
 0x220   :  { %855 = vmatprep.subr.bf16.mxu1 %v854_v21 }
 0x221   :  { %v858_v28 = vpack.c.bf16 %v405_v26, %v404_v25 }
 0x222   :  { %v329_v29 = vpop.permute.xlu0 %328  ;;  %v411_v30 = vpop.permute.xlu1 %410 }
 0x223   :  { %v338_v32 = vmul.f32 %v722_v18, %v329_v29  ;;  %857 = vmatpush3.bf16.msra.mxu1 %v856_v27  ;;  %v423_v37 = vmul.f32 %v726_v33, %v411_v30 }
 0x224   :  { %859 = vmatprep.subr.bf16.mxu1 %v858_v28 }
 0x225   :  { %v860_v34 = vpack.c.bf16 %v338_v32, %v337_v31 }
 0x226   :  { %v413_v36 = vpop.permute.xlu0 %412  ;;  %v415_v39 = vpop.permute.xlu1 %414 }
 0x227   :  { %v424_v35 = vmul.f32 %v726_v33, %v413_v36  ;;  %861 = vmatpush3.bf16.msra.mxu1 %v860_v34  ;;  %v425_v44 = vmul.f32 %v726_v33, %v415_v39 }
 0x229   :  { %v862_v41 = vpack.c.bf16 %v424_v35, %v423_v37 }
 0x22a   :  { %v417_v43 = vpop.permute.xlu0 %416  ;;  %587 = vmatmul.mubr.f32.vlgmr.msra.gmra.mrb[0].mxu1 %v435_v38 }
 0x22b   :  { %v426_v45 = vmul.f32 %v726_v33, %v417_v43  ;;  %863 = vmatprep.subr.bf16.mxu1 %v862_v41  ;;  %591 = vmatprep.mubr.f32.mxu1 %v439_v40 }
 0x22c   :  { %865 = vmatpush3.bf16.msra.mxu1 %v862_v41 }
 0x22d   :  { %v866_v48 = vpack.c.bf16 %v426_v45, %v425_v44 }
 0x22e   :  { %592 = vmatmul.mubr.f32.gmra.mrb[2].mxu1 %v438_v46 }
 0x22f   :  { %867 = vmatprep.subr.bf16.mxu1 %v866_v48  ;;  %596 = vmatprep.mubr.f32.mxu1 %v442_v47 }
 0x230   :  { %869 = vmatpush3.bf16.msra.mxu1 %v866_v48 }
 0x231   :  { %871 = vmatprep.subr.bf16.mxu1 %v1025_v42 }
 0x232   :  { %597 = vmatmul.mubr.f32.gmra.mrb[4].mxu1 %v441_v49 }
 0x233   :  { %601 = vmatprep.mubr.f32.mxu1 %v445_v50 }
 0x234   :  { %873 = vmatpush3.bf16.msra.mxu1 %v1025_v42  ;;  %v446_v42 = vld [vmem:[%s1175_s4 + $0x58] sm:$0xff] }
 0x236   :  { %602 = vmatmul.mubr.f32.gmra.mrb[6].mxu1 %v444_v51 }
 0x237   :  { %797 = vmatprep.mubr.msk.f32.mxu1 %vm509_vm1, %v437_v52  ;;  %v492_v2 = vpop.permute.xlu1 %491 }
 0x23a   :  { %798 = vmatmul.mubr.msk.f32.vlgmr.msra.gmra.mrb[8].mxu1 %vm509_vm1, %v440_v53 }
 0x23b   :  { %800 = vmatprep.mubr.msk.f32.mxu1 %vm509_vm1, %v443_v54  ;;  %v497_v0 = vpop.permute.xlu0 %496  ;;  %v502_v12 = vpop.permute.xlu1 %501 }
 0x23e   :  { %801 = vmatmul.mubr.msk.f32.gmra.mrb[10].mxu1 %vm509_vm1, %v446_v42 }
 0x23f   :  { %v507_v10 = vpop.permute.xlu0 %506 }
 0x2fd   :  { %v763_v55 = vpop.f32.mrb[0].mxu1 }
 0x2fe   :  { %v764_v56 = vpop.f32.mrb[1].mxu1 }
 0x2ff   :  { %v765_v57 = vadd.f32 %v764_v56, %v763_v55 }
 0x301   :  { %v766_v58 = vpop.f32.mrb[2].mxu1  ;;  %v589_v7 = vadd.f32 %v765_v57, %v492_v2 }
 0x302   :  { %v767_v59 = vpop.f32.mrb[3].mxu1 }
 0x303   :  { %v768_v60 = vadd.f32 %v767_v59, %v766_v58 }
 0x305   :  { %v769_v61 = vpop.f32.mrb[4].mxu1  ;;  %v594_v5 = vadd.f32 %v768_v60, %v497_v0 }
 0x306   :  { %v770_v62 = vpop.f32.mrb[5].mxu1 }
 0x307   :  { %v771_v63 = vadd.f32 %v770_v62, %v769_v61 }
 0x309   :  { %v772_v1 = vpop.f32.mrb[6].mxu1  ;;  %v599_v17 = vadd.f32 %v771_v63, %v502_v12 }
 0x30a   :  { %v773_v3 = vpop.f32.mrb[7].mxu1 }
 0x30b   :  { %v774_v4 = vadd.f32 %v773_v3, %v772_v1 }
 0x30d   :  { %v799_v6 = vpop.f32.mrb[8].mxu1  ;;  %v604_v14 = vadd.f32 %v774_v4, %v507_v10 }
 0x30e   :  { %v679_v8 = vadd.f32 %v799_v6, %v594_v5  ;;  %v673_v9 = vpop.f32.mrb[9].mxu1 }
 0x30f   :  { %v674_v11 = vadd.f32 %v673_v9, %v589_v7 }
 0x310   :  { %v693_v13 = vmax.f32 %v679_v8, 0.0 }
 0x311   :  { %v692_v15 = vmax.f32 %v674_v11, 0.0  ;;  %v802_v16 = vpop.f32.mrb[10].mxu1 }
 0x312   :  { %697 = vst [vmem:[%s1177_s6 + $0x8] sm:$0xff] %v693_v13  ;;  %v689_v18 = vadd.f32 %v802_v16, %v604_v14  ;;  %v683_v19 = vpop.f32.mrb[11].mxu1 }
 0x313   :  { %696 = vst [vmem:[%s1177_s6] sm:$0xff] %v692_v15  ;;  %v684_v20 = vadd.f32 %v683_v19, %v599_v17 }
 0x314   :  { %v695_v21 = vmax.f32 %v689_v18, 0.0 }
 0x315   :  { %v694_v22 = vmax.f32 %v684_v20, 0.0 }
 0x316   :  { %699 = vst [vmem:[%s1177_s6 + $0x18] sm:$0xff] %v695_v21 }
 0x317   :  { %698 = vst [vmem:[%s1177_s6 + $0x10] sm:$0xff] %v694_v22 }

</bundles_post_ra>
